<compile_context>
chip_gen: v7x
topology: tpu7x:2x2x1
jax: 0.10.0
libtpu: 0.0.40
codegen_flags: <defaults>
</compile_context>

<pallas_src>
import jax
import jax.numpy as jnp
from jax import lax
from jax.experimental import pallas as pl
from jax.experimental.pallas import tpu as pltpu


def policy_net_kernel(x_ref, w1_ref, w2_ref, out_ref):
    # x_ref:   [TB, n_states]         (batch-tile of the input)
    # w1_ref:  [hidden,    n_states]  (native PyTorch L1.weight layout)
    # w2_ref:  [n_actions, hidden]    (native PyTorch L2.weight layout)
    # out_ref: [n_actions, TB]        (batch on the lane axis -> lane-dense store)
    x = x_ref[...]
    w1 = w1_ref[...]
    w2 = w2_ref[...]

    # h^T = W1 @ x^T : contract n_states (last axis of both) -> [hidden, TB].
    ht = lax.dot_general(
        w1, x,
        dimension_numbers=(((1,), (1,)), ((), ())),
        preferred_element_type=jnp.float32,
    )
    ht = jnp.maximum(ht, 0.0)

    # logits^T = W2 @ h^T : contract hidden -> [n_actions, TB].
    lt = lax.dot_general(
        w2, ht,
        dimension_numbers=(((1,), (0,)), ((), ())),
        preferred_element_type=jnp.float32,
    )

    # Softmax over the (few, statically known) action rows: explicit row
    # maxima / sums on [1, TB] slices keep the reduction on the VPU.
    n_act = lt.shape[0]
    m = lt[0:1, :]
    for i in range(1, n_act):
        m = jnp.maximum(m, lt[i:i + 1, :])
    e = jnp.exp(lt - m)                      # [n_act, TB], broadcast over sublanes
    s = e[0:1, :]
    for i in range(1, n_act):
        s = s + e[i:i + 1, :]
    out_ref[...] = (e * pl.reciprocal(s, approx=False)).astype(out_ref.dtype)


def policy_net_forward(inputs, w1, w2, *, block_b=4096):
    """inputs: [B, n_states] f32; w1: [hidden, n_states]; w2: [n_actions, hidden].

    Returns softmax probabilities with shape [B, n_actions] (module layout).

    Default path: one full-array block (grid=(1,)) -- this tiny MLP is
    overhead-bound, so fewer/bigger blocks win.  Only for B > block_b do we
    tile the batch (lane) axis in 128-multiple tiles, padding B up so the grid
    never degenerates into many tiny steps; the "parallel" grid axis then lets
    v7x split the batch across its two TensorCores.
    """
    B, n_states = inputs.shape
    hidden, n_states_w = w1.shape
    n_actions, hidden_w = w2.shape
    assert n_states_w == n_states and hidden_w == hidden

    if B <= block_b:
        # Single full-array block: exempt from the (8,128) divisibility rule,
        # zero per-step grid overhead.  Covers every realistic RL batch here
        # (footprint is ~80 bytes per row).
        tb = B
        b_pad = B
        x_in = inputs
    else:
        # Huge batches: tile the lane (batch) axis.  tb must be a multiple of
        # 128 (lane dim of the output block); pad B up instead of shrinking tb.
        assert block_b % 128 == 0, "block_b must be a multiple of 128"
        tb = block_b
        b_pad = ((B + tb - 1) // tb) * tb
        x_in = inputs if b_pad == B else jnp.pad(inputs, ((0, b_pad - B), (0, 0)))

    grid = (b_pad // tb,)

    out_t = pl.pallas_call(
        policy_net_kernel,
        out_shape=jax.ShapeDtypeStruct((n_actions, b_pad), jnp.float32),
        grid=grid,
        in_specs=[
            pl.BlockSpec((tb, n_states), lambda i: (i, 0)),
            pl.BlockSpec((hidden, n_states), lambda i: (0, 0)),
            pl.BlockSpec((n_actions, hidden), lambda i: (0, 0)),
        ],
        out_specs=pl.BlockSpec((n_actions, tb), lambda i: (0, i)),
        compiler_params=pltpu.CompilerParams(
            dimension_semantics=("parallel",),
        ),
    )(x_in, w1, w2)

    # Back to the module's [B, n_actions] layout (tiny [n_actions, B] transpose).
    return out_t[:, :B].T


def _reference(x, w1, w2):
    h = jnp.maximum(x @ w1.T, 0.0)
    logits = h @ w2.T
    return jax.nn.softmax(logits, axis=1)


if __name__ == "__main__":
    # Module hyperparameters implied by the class / getactionDDPG (one-hot of 16 states).
    n_states_num = 16
    n_actions_num = 4
    hidden_size = 32
    batch = 2

    key = jax.random.PRNGKey(0)
    k_x, k_w1, k_w2, k_xb, k_xl = jax.random.split(key, 5)

    # --- Case 1: spec-faithful init (PyTorch __init__ fills every parameter with 0.1),
    #             tiny batch (single-step action selection path, one block). ---
    w1_const = jnp.full((hidden_size, n_states_num), 0.1, dtype=jnp.float32)   # L1.weight
    w2_const = jnp.full((n_actions_num, hidden_size), 0.1, dtype=jnp.float32)  # L2.weight
    x = jax.random.normal(k_x, (batch, n_states_num), dtype=jnp.float32)

    out = policy_net_forward(x, w1_const, w2_const)
    out = jax.block_until_ready(out)

    ref = _reference(x, w1_const, w2_const)
    assert out.shape == (batch, n_actions_num)
    assert jnp.allclose(out, ref, atol=1e-5, rtol=1e-5)
    assert jnp.allclose(jnp.sum(out, axis=1), 1.0, atol=1e-5)

    # --- Case 2: moderate batch, random weights -- still one big block (grid=(1,)). ---
    batch_big = 16
    w1_rand = 0.1 * jax.random.normal(k_w1, (hidden_size, n_states_num), dtype=jnp.float32)
    w2_rand = 0.1 * jax.random.normal(k_w2, (n_actions_num, hidden_size), dtype=jnp.float32)
    x_big = jax.random.normal(k_xb, (batch_big, n_states_num), dtype=jnp.float32)

    out_big = policy_net_forward(x_big, w1_rand, w2_rand)
    out_big = jax.block_until_ready(out_big)

    ref_big = _reference(x_big, w1_rand, w2_rand)
    assert out_big.shape == (batch_big, n_actions_num)
    assert jnp.allclose(out_big, ref_big, atol=1e-5, rtol=1e-5)
    assert jnp.allclose(jnp.sum(out_big, axis=1), 1.0, atol=1e-5)

    # --- Case 3: ragged large batch exercising the tiled+padded path
    #             (B=1000 > block_b=128 -> padded to 1024, grid=(8,), lane-dense tiles). ---
    batch_large = 1000
    x_large = jax.random.normal(k_xl, (batch_large, n_states_num), dtype=jnp.float32)

    out_large = policy_net_forward(x_large, w1_rand, w2_rand, block_b=128)
    out_large = jax.block_until_ready(out_large)

    ref_large = _reference(x_large, w1_rand, w2_rand)
    assert out_large.shape == (batch_large, n_actions_num)
    assert jnp.allclose(out_large, ref_large, atol=1e-5, rtol=1e-5)
    assert jnp.allclose(jnp.sum(out_large, axis=1), 1.0, atol=1e-5)

    print("KERNEL_OK")
</pallas_src>

<mosaic_0001>
module attributes {stable_mosaic.version = 11 : i64} {
  func.func @policy_net_kernel(%arg0: i32, %arg1: memref<2x16xf32, #tpu.memory_space<vmem>>, %arg2: memref<32x16xf32, #tpu.memory_space<vmem>>, %arg3: memref<4x32xf32, #tpu.memory_space<vmem>>, %arg4: memref<4x2xf32, #tpu.memory_space<vmem>>) attributes {dimension_semantics = [#tpu.dimension_semantics<parallel>], iteration_bounds = array<i64: 1>, scalar_prefetch = 0 : i64, scratch_operands = 0 : i64, tpu.core_type = #tpu.core_type<tc>, window_params = [{transform_indices = @transform_0, window_bounds = array<i64: 2, 16>}, {pipeline_mode = #tpu.pipeline_mode<synchronous>, transform_indices = @transform_1, window_bounds = array<i64: 32, 16>}, {pipeline_mode = #tpu.pipeline_mode<synchronous>, transform_indices = @transform_2, window_bounds = array<i64: 4, 32>}, {transform_indices = @transform_3, window_bounds = array<i64: 4, 2>}]} {
    %c0 = arith.constant 0 : index
    %c0_0 = arith.constant 0 : index
    %0 = vector.load %arg1[%c0, %c0_0] : memref<2x16xf32, #tpu.memory_space<vmem>>, vector<2x16xf32>
    %c0_1 = arith.constant 0 : index
    %c0_2 = arith.constant 0 : index
    %1 = vector.load %arg2[%c0_1, %c0_2] : memref<32x16xf32, #tpu.memory_space<vmem>>, vector<32x16xf32>
    %c0_3 = arith.constant 0 : index
    %c0_4 = arith.constant 0 : index
    %2 = vector.load %arg3[%c0_3, %c0_4] : memref<4x32xf32, #tpu.memory_space<vmem>>, vector<4x32xf32>
    %cst = arith.constant dense<0.000000e+00> : vector<32x2xf32>
    %3 = tpu.matmul %1, %0, %cst {dimension_numbers = #tpu.dot_dimension_numbers<[1], [1], [0], [0], [0, 0, 1, 0], [], []>} : vector<32x16xf32>, vector<2x16xf32>, vector<32x2xf32> -> vector<32x2xf32>
    %cst_5 = arith.constant 0.000000e+00 : f32
    %4 = vector.broadcast %cst_5 : f32 to vector<32x2xf32>
    %5 = arith.maximumf %3, %4 : vector<32x2xf32>
    %cst_6 = arith.constant dense<0.000000e+00> : vector<4x2xf32>
    %6 = tpu.matmul %2, %5, %cst_6 {dimension_numbers = #tpu.dot_dimension_numbers<[1], [0], [0], [1], [0, 0, 1, 1], [], []>} : vector<4x32xf32>, vector<32x2xf32>, vector<4x2xf32> -> vector<4x2xf32>
    %7 = vector.extract_strided_slice %6 {offsets = [0, 0], sizes = [1, 2], strides = [1, 1]} : vector<4x2xf32> to vector<1x2xf32>
    %8 = vector.extract_strided_slice %6 {offsets = [1, 0], sizes = [1, 2], strides = [1, 1]} : vector<4x2xf32> to vector<1x2xf32>
    %9 = arith.maximumf %7, %8 : vector<1x2xf32>
    %10 = vector.extract_strided_slice %6 {offsets = [2, 0], sizes = [1, 2], strides = [1, 1]} : vector<4x2xf32> to vector<1x2xf32>
    %11 = arith.maximumf %9, %10 : vector<1x2xf32>
    %12 = vector.extract_strided_slice %6 {offsets = [3, 0], sizes = [1, 2], strides = [1, 1]} : vector<4x2xf32> to vector<1x2xf32>
    %13 = arith.maximumf %11, %12 : vector<1x2xf32>
    %14 = vector.broadcast %13 : vector<1x2xf32> to vector<4x2xf32>
    %15 = arith.subf %6, %14 : vector<4x2xf32>
    %16 = math.exp %15 : vector<4x2xf32>
    %17 = vector.extract_strided_slice %16 {offsets = [0, 0], sizes = [1, 2], strides = [1, 1]} : vector<4x2xf32> to vector<1x2xf32>
    %18 = vector.extract_strided_slice %16 {offsets = [1, 0], sizes = [1, 2], strides = [1, 1]} : vector<4x2xf32> to vector<1x2xf32>
    %19 = arith.addf %17, %18 : vector<1x2xf32>
    %20 = vector.extract_strided_slice %16 {offsets = [2, 0], sizes = [1, 2], strides = [1, 1]} : vector<4x2xf32> to vector<1x2xf32>
    %21 = arith.addf %19, %20 : vector<1x2xf32>
    %22 = vector.extract_strided_slice %16 {offsets = [3, 0], sizes = [1, 2], strides = [1, 1]} : vector<4x2xf32> to vector<1x2xf32>
    %23 = arith.addf %21, %22 : vector<1x2xf32>
    %24 = tpu.reciprocal %23 : vector<1x2xf32> -> vector<1x2xf32>
    %25 = vector.broadcast %24 : vector<1x2xf32> to vector<4x2xf32>
    %26 = arith.mulf %16, %25 : vector<4x2xf32>
    %c0_7 = arith.constant 0 : index
    %c0_8 = arith.constant 0 : index
    %27 = vector.load %arg4[%c0_7, %c0_8] : memref<4x2xf32, #tpu.memory_space<vmem>>, vector<4x2xf32>
    tpu.vector_store %arg4[%c0_7, %c0_8], %26 {strides = array<i32>} : memref<4x2xf32, #tpu.memory_space<vmem>>, vector<4x2xf32>,
    return
  }
  func.func @transform_0(%arg0: i32) -> (i32, i32) {
    %c0_i32 = arith.constant 0 : i32
    %c0_i32_0 = arith.constant 0 : i32
    return %arg0, %c0_i32 : i32, i32
  }
  func.func @transform_1(%arg0: i32) -> (i32, i32) {
    %c0_i32 = arith.constant 0 : i32
    %c0_i32_0 = arith.constant 0 : i32
    %c0_i32_1 = arith.constant 0 : i32
    return %c0_i32, %c0_i32_0 : i32, i32
  }
  func.func @transform_2(%arg0: i32) -> (i32, i32) {
    %c0_i32 = arith.constant 0 : i32
    %c0_i32_0 = arith.constant 0 : i32
    %c0_i32_1 = arith.constant 0 : i32
    return %c0_i32, %c0_i32_0 : i32, i32
  }
  func.func @transform_3(%arg0: i32) -> (i32, i32) {
    %c0_i32 = arith.constant 0 : i32
    %c0_i32_0 = arith.constant 0 : i32
    return %c0_i32, %arg0 : i32, i32
  }
}

</mosaic_0001>

<bundles_post_ra>
// kernel: tpu_custom_call.1
= control target key start
LH: loop header
LB: loop body
LE: loop exit
PB: predicated region body
PF: predicated region fallthrough
CT: control target
= control target key end

     0   :  { %vm20_vm0 = vcmask 130048   ;;  %v286_v5 = vmov 0.0|0.0   ;;  %vm287_vm1 = vmmov 0   ;;  %v288_v6 = vmov 0.0   ;;  %s330_s0 = inlined_call_operand.vmem [shape: f32[2,16], index: 0, kind: input, shape index: {}]   ;;  %s331_s1 = inlined_call_operand.vmem [shape: f32[32,16], index: 1, kind: input, shape index: {}]   ;;  %s332_s2 = inlined_call_operand.vmem [shape: f32[4,32], index: 2, kind: input, shape index: {}]   ;;  %s333_s3 = inlined_call_operand.vmem [shape: f32[4,2], index: 3, kind: output, shape index: {}]  }
   0x1   :  { %v14_v0 = vld [vmem:[%s330_s0] sm:$0x3]  ;;  %v16_v2 = vld [vmem:[%s331_s1 + $0x8] sm:$0xff]  ;;  %v17_v3 = vld [vmem:[%s331_s1 + $0x10] sm:$0xff]  ;;  %273 = vmatprep.subr.bf16.mxu1 %v286_v5  ;;  %270 = vmatprep.mubr.msk.f32.mxu1 %vm287_vm1, %v288_v6  ;;  %vm125_vm2 = vcmask 261120   ;;  %v209_v18 = vlaneseq  ;;  %vm232_vm3 = vcmask 11264  }
   0x2   :  { %v15_v1 = vld [vmem:[%s331_s1] sm:$0xff]  ;;  %254 = vmatprep.subr.msk.mxu0 %vm20_vm0, %v14_v0  ;;  %v18_v4 = vld [vmem:[%s331_s1 + $0x18] sm:$0xff] }
   0x3   :  { %256 = vmatprep.mubr.msk.f32.mxu0 %vm20_vm0, %v15_v1  ;;  %255 = vmatpush3.xpose.msk.msra.mxu0 %vm20_vm0, %v14_v0  ;;  %v19_v17 = vld [vmem:[%s332_s2] sm:$0xf]  ;;  %v210_v21 = vshrl.u32 %v209_v18, 7 }
   0x5   :  { %v211_v27 = vsub.s32 0, %v210_v21 }
   0x6   :  { %257 = vmatmul.mubr.msk.f32.vlgmr.msra.gmra.mrb[0].mxu0 %vm20_vm0, %v16_v2 }
   0x7   :  { %259 = vmatprep.mubr.msk.f32.mxu0 %vm20_vm0, %v17_v3 }
   0xa   :  { %260 = vmatmul.mubr.msk.f32.gmra.mrb[2].mxu0 %vm20_vm0, %v18_v4 }
  0xd9   :  { %v258_v7 = vpop.f32.mrb[0].mxu0 }
  0xda   :  { %v122_v8 = vmax.f32 %v258_v7, 0.0  ;;  %v102_v9 = vpop.f32.mrb[1].mxu0 }
  0xdb   :  { %v121_v10 = vmax.f32 %v102_v9, 0.0 }
  0xdd   :  { %v261_v11 = vpop.f32.mrb[2].mxu0  ;;  %v274_v12 = vpack.c.bf16 %v122_v8, %v121_v10 }
  0xde   :  { %v124_v13 = vmax.f32 %v261_v11, 0.0  ;;  %v112_v14 = vpop.f32.mrb[3].mxu0 }
  0xdf   :  { %v123_v15 = vmax.f32 %v112_v14, 0.0  ;;  %275 = vmatpush3.bf16.msra.mxu1 %v274_v12 }
  0xe0   :  { %276 = vmatprep.subr.bf16.mxu1 %v286_v5 }
  0xe1   :  { %v277_v16 = vpack.c.bf16 %v124_v13, %v123_v15 }
  0xe3   :  { %278 = vmatpush3.bf16.msra.mxu1 %v277_v16 }
  0xe6   :  { %271 = vmatmul.mubr.msk.f32.vlgmr.msra.gmra.mrb[0].mxu1 %vm125_vm2, %v19_v17 }
 0x1b9   :  { %v195_v19 = vpop.f32.mrb[0].mxu1 }
 0x1ba   :  { %v200_v20 = vrot.slane %v195_v19, 1  ;;  %v272_v22 = vpop.f32.mrb[1].mxu1  ;;  %v203_v24 = vrot.slane %v195_v19, 2  ;;  %v206_v26 = vrot.slane %v195_v19, 3 }
 0x1bc   :  { %v202_v23 = vmax.f32 %v195_v19, %v200_v20 }
 0x1be   :  { %v205_v25 = vmax.f32 %v202_v23, %v203_v24 }
 0x1c0   :  { %v208_v28 = vmax.f32 %v205_v25, %v206_v26 }
 0x1c2   :  { %v212_v29 = vrot.slane %v208_v28, %v211_v27 }
 0x1c4   :  { %v213_v30 = vsub.f32 %v195_v19, %v212_v29 }
 0x1c6   :  { %v214_v31 = vmul.f32 1.442695, %v213_v30 }
 0x1c8   :  { %282 = vpow2.f32 %v214_v31 }
 0x1d2   :  { %v283_v32 = vpop.eup %282 }
 0x1d3   :  { %v217_v33 = vrot.slane %v283_v32, 1  ;;  %v220_v35 = vrot.slane %v283_v32, 2  ;;  %v223_v37 = vrot.slane %v283_v32, 3 }
 0x1d5   :  { %v219_v34 = vadd.f32 %v283_v32, %v217_v33 }
 0x1d7   :  { %v222_v36 = vadd.f32 %v220_v35, %v219_v34 }
 0x1d9   :  { %v225_v38 = vadd.f32 %v223_v37, %v222_v36 }
 0x1db   :  { %284 = vrcp.f32 %v225_v38 }
 0x1e5   :  { %v285_v39 = vpop.eup %284 }
 0x1e6   :  { %v230_v40 = vrot.slane %v285_v39, %v211_v27 }
 0x1e8   :  { %v231_v41 = vmul.f32 %v283_v32, %v230_v40 }
 0x1ea   :  { %233 = vst.msk [vmem:[%s333_s3] sm:$0xf] %vm232_vm3, %v231_v41 }

</bundles_post_ra>
